<compile_context>
chip_gen: v7x
topology: tpu7x:2x2x1
jax: 0.10.0
libtpu: 0.0.40
codegen_flags: <defaults>
</compile_context>

<pallas_src>
import functools

import jax
import jax.numpy as jnp
from jax.experimental import pallas as pl
from jax.experimental.pallas import tpu as pltpu

_LANE = 128      # lane width of a vreg (last dim)
_SUBLANE = 8     # sublane count of a vreg (second-to-last dim)

_VMEM = pl.BlockSpec(memory_space=pltpu.MemorySpace.VMEM)


def _round_up(n, m):
    return ((n + m - 1) // m) * m


# ----------------------------------------------------------------------------
# Fused Pallas kernel: full VAE forward pass in a single kernel body.
# ----------------------------------------------------------------------------
def _vae_fused_kernel(*refs, n_enc, dec_acts, latent_pad):
    """refs layout:
       x, eps,
       (w_enc_i, b_enc_i) * n_enc,
       w_head, b_head,                 # mu||logvar fused head
       (w_dec_i, b_dec_i) * len(dec_acts),
       recon_out, mu_out, logvar_out
    All weights are [in_pad, out_pad], biases [1, out_pad]; all pads are
    zero-filled so padded lanes stay exactly zero through ReLU layers.
    """
    idx = 0
    x = refs[idx][...]; idx += 1
    eps = refs[idx][...]; idx += 1

    # ---- encoder: Linear + ReLU ----
    h = x
    for _ in range(n_enc):
        w = refs[idx][...]
        b = refs[idx + 1][...]
        idx += 2
        h = jnp.maximum(jnp.dot(h, w, preferred_element_type=jnp.float32) + b, 0.0)

    # ---- fused mu/logvar head (one matmul, split after) ----
    w = refs[idx][...]
    b = refs[idx + 1][...]
    idx += 2
    head = jnp.dot(h, w, preferred_element_type=jnp.float32) + b
    mu = head[:, :latent_pad]
    logvar = head[:, latent_pad:]

    # ---- reparameterize: z = mu + eps * exp(0.5*logvar)  (exp -> EUP) ----
    z = mu + eps * jnp.exp(0.5 * logvar)

    # ---- decoder ----
    d = z
    for act in dec_acts:
        w = refs[idx][...]
        b = refs[idx + 1][...]
        idx += 2
        d = jnp.dot(d, w, preferred_element_type=jnp.float32) + b
        if act == "relu":
            d = jnp.maximum(d, 0.0)
        elif act == "sigmoid":
            d = jax.nn.sigmoid(d)
        # "none": identity (first decoder Linear has no activation in the spec)

    recon_ref = refs[idx]
    mu_ref = refs[idx + 1]
    logvar_ref = refs[idx + 2]
    recon_ref[...] = d.astype(recon_ref.dtype)
    mu_ref[...] = mu.astype(mu_ref.dtype)
    logvar_ref[...] = logvar.astype(logvar_ref.dtype)


# ----------------------------------------------------------------------------
# JAX wrapper: pads inputs, calls the single fused kernel, slices real widths.
# ----------------------------------------------------------------------------
def vae_forward(pp, x, eps):
    """pp: padded params pytree (arrays only). x:[B,in_dim]  eps:[B,latent]."""
    batch, in_dim = x.shape
    latent_dim = eps.shape[1]

    in_pad = pp["encoder"][0][0].shape[0] if pp["encoder"] else pp["head"][0].shape[0]
    latent_pad = pp["head"][0].shape[1] // 2
    out_pad = pp["decoder"][-1][0].shape[1]
    bp = _round_up(max(batch, _SUBLANE), _SUBLANE)

    xp = jnp.zeros((bp, in_pad), x.dtype).at[:batch, :in_dim].set(x)
    epsp = jnp.zeros((bp, latent_pad), eps.dtype).at[:batch, :latent_dim].set(eps)

    n_enc = len(pp["encoder"])
    n_dec = len(pp["decoder"])
    dec_acts = tuple(["none"] + ["relu"] * (n_dec - 2) + ["sigmoid"])

    args = [xp, epsp]
    for w, b in pp["encoder"]:
        args += [w, b]
    args += [pp["head"][0], pp["head"][1]]
    for w, b in pp["decoder"]:
        args += [w, b]

    kernel = functools.partial(
        _vae_fused_kernel, n_enc=n_enc, dec_acts=dec_acts, latent_pad=latent_pad
    )

    recon_p, mu_p, logvar_p = pl.pallas_call(
        kernel,
        out_shape=(
            jax.ShapeDtypeStruct((bp, out_pad), x.dtype),
            jax.ShapeDtypeStruct((bp, latent_pad), x.dtype),
            jax.ShapeDtypeStruct((bp, latent_pad), x.dtype),
        ),
        in_specs=[_VMEM] * len(args),
        out_specs=(_VMEM, _VMEM, _VMEM),
    )(*args)

    recon = recon_p[:batch, :in_dim]
    mu = mu_p[:batch, :latent_dim]
    logvar = logvar_p[:batch, :latent_dim]
    return recon, mu, logvar


# ----------------------------------------------------------------------------
# Parameter construction (PyTorch-default-style init, arrays only)
# ----------------------------------------------------------------------------
def _init_linear(key, in_dim, out_dim, dtype=jnp.float32):
    kw, kb = jax.random.split(key)
    bound = 1.0 / (in_dim ** 0.5)
    w = jax.random.uniform(kw, (out_dim, in_dim), dtype, -bound, bound)  # [out,in]
    b = jax.random.uniform(kb, (out_dim,), dtype, -bound, bound)
    return w, b


def init_vae_params(key, layer_sizes, latent_dim, dtype=jnp.float32):
    """Raw (unpadded, PyTorch-layout) params. Activations are implied by
    position, never stored (keeps the pytree array-only)."""
    raw = {"encoder": [], "decoder": []}
    n_enc = len(layer_sizes) - 1
    rev = layer_sizes[::-1]
    n_dec = 1 + (len(rev) - 2) + 1
    keys = jax.random.split(key, n_enc + 2 + n_dec)
    ki = 0

    for i in range(n_enc):                       # Linear + ReLU
        raw["encoder"].append(_init_linear(keys[ki], layer_sizes[i],
                                           layer_sizes[i + 1], dtype)); ki += 1

    raw["mu"] = _init_linear(keys[ki], layer_sizes[-1], latent_dim, dtype); ki += 1
    raw["logvar"] = _init_linear(keys[ki], layer_sizes[-1], latent_dim, dtype); ki += 1

    # Decoder (matches the PyTorch construction):
    #   Linear(latent, rev[0])  (no activation)
    #   Linear(rev[i], rev[i+1]) + ReLU   for i in range(len(rev)-2)
    #   Linear(rev[-2], rev[-1]) + Sigmoid
    raw["decoder"].append(_init_linear(keys[ki], latent_dim, rev[0], dtype)); ki += 1
    for i in range(len(rev) - 2):
        raw["decoder"].append(_init_linear(keys[ki], rev[i], rev[i + 1], dtype)); ki += 1
    raw["decoder"].append(_init_linear(keys[ki], rev[-2], rev[-1], dtype)); ki += 1
    return raw


def prepare_pallas_params(raw, dtype=jnp.float32):
    """Pre-transpose to [in,out], zero-pad both axes to multiples of 128,
    biases to (1, out_pad); fuse mu/logvar into one head weight."""
    def pad_wb(w, b):
        out_d, in_d = w.shape
        ip, op = _round_up(in_d, _LANE), _round_up(out_d, _LANE)
        wp = jnp.zeros((ip, op), dtype).at[:in_d, :out_d].set(w.T.astype(dtype))
        bp = jnp.zeros((1, op), dtype).at[0, :out_d].set(b.astype(dtype))
        return wp, bp

    pp = {
        "encoder": [pad_wb(w, b) for (w, b) in raw["encoder"]],
        "decoder": [pad_wb(w, b) for (w, b) in raw["decoder"]],
    }
    wmu_p, bmu_p = pad_wb(*raw["mu"])
    wlv_p, blv_p = pad_wb(*raw["logvar"])
    pp["head"] = (jnp.concatenate([wmu_p, wlv_p], axis=1),
                  jnp.concatenate([bmu_p, blv_p], axis=1))
    return pp


# ----------------------------------------------------------------------------
# Pure-JAX reference (unpadded) for correctness checking
# ----------------------------------------------------------------------------
def vae_forward_ref(raw, x, eps):
    def lin(h, w, b):
        return h @ w.T + b

    h = x
    for w, b in raw["encoder"]:
        h = jnp.maximum(lin(h, w, b), 0.0)
    mu = lin(h, *raw["mu"])
    logvar = lin(h, *raw["logvar"])
    z = mu + eps * jnp.exp(0.5 * logvar)
    d = z
    n_dec = len(raw["decoder"])
    for i, (w, b) in enumerate(raw["decoder"]):
        d = lin(d, w, b)
        if i == n_dec - 1:
            d = jax.nn.sigmoid(d)
        elif i > 0:
            d = jnp.maximum(d, 0.0)
    return d, mu, logvar


# ----------------------------------------------------------------------------
if __name__ == "__main__":
    layer_sizes = [64, 48, 32]   # MLP layer sizes (input dim = 64)
    latent_dim = 16
    batch = 8

    key = jax.random.PRNGKey(0)
    k_params, k_x, k_eps = jax.random.split(key, 3)

    raw_params = init_vae_params(k_params, layer_sizes, latent_dim)
    pallas_params = prepare_pallas_params(raw_params)

    x = jax.random.uniform(k_x, (batch, layer_sizes[0]), jnp.float32)
    # eps is the randn of reparameterize(); drawn here deterministically so the
    # Pallas path and the reference path see identical noise.
    eps = jax.random.normal(k_eps, (batch, latent_dim), jnp.float32)

    fwd = jax.jit(vae_forward)
    recon, mu, logvar = fwd(pallas_params, x, eps)
    jax.block_until_ready((recon, mu, logvar))

    recon_r, mu_r, logvar_r = vae_forward_ref(raw_params, x, eps)
    assert recon.shape == (batch, layer_sizes[0])
    assert mu.shape == (batch, latent_dim) and logvar.shape == (batch, latent_dim)
    assert jnp.allclose(recon, recon_r, atol=1e-5, rtol=1e-5)
    assert jnp.allclose(mu, mu_r, atol=1e-5, rtol=1e-5)
    assert jnp.allclose(logvar, logvar_r, atol=1e-5, rtol=1e-5)

    # TODO(synk): generate_images() is a host-side sampling loop around
    # decode(); not implemented as a kernel (decode is covered by the fused
    # forward and could be split out the same way if needed).
    print("KERNEL_OK")
</pallas_src>

<mosaic_0001>
module attributes {stable_mosaic.version = 11 : i64} {
  func.func @_vae_fused_kernel(%arg0: memref<8x128xf32, #tpu.memory_space<vmem>>, %arg1: memref<8x128xf32, #tpu.memory_space<vmem>>, %arg2: memref<128x128xf32, #tpu.memory_space<vmem>>, %arg3: memref<1x128xf32, #tpu.memory_space<vmem>>, %arg4: memref<128x128xf32, #tpu.memory_space<vmem>>, %arg5: memref<1x128xf32, #tpu.memory_space<vmem>>, %arg6: memref<128x256xf32, #tpu.memory_space<vmem>>, %arg7: memref<1x256xf32, #tpu.memory_space<vmem>>, %arg8: memref<128x128xf32, #tpu.memory_space<vmem>>, %arg9: memref<1x128xf32, #tpu.memory_space<vmem>>, %arg10: memref<128x128xf32, #tpu.memory_space<vmem>>, %arg11: memref<1x128xf32, #tpu.memory_space<vmem>>, %arg12: memref<128x128xf32, #tpu.memory_space<vmem>>, %arg13: memref<1x128xf32, #tpu.memory_space<vmem>>, %arg14: memref<8x128xf32, #tpu.memory_space<vmem>>, %arg15: memref<8x128xf32, #tpu.memory_space<vmem>>, %arg16: memref<8x128xf32, #tpu.memory_space<vmem>>) attributes {dimension_semantics = [], scalar_prefetch = 0 : i64, scratch_operands = 0 : i64, tpu.core_type = #tpu.core_type<tc>} {
    %c0 = arith.constant 0 : index
    %c0_0 = arith.constant 0 : index
    %0 = vector.load %arg0[%c0, %c0_0] : memref<8x128xf32, #tpu.memory_space<vmem>>, vector<8x128xf32>
    %c0_1 = arith.constant 0 : index
    %c0_2 = arith.constant 0 : index
    %1 = vector.load %arg1[%c0_1, %c0_2] : memref<8x128xf32, #tpu.memory_space<vmem>>, vector<8x128xf32>
    %c0_3 = arith.constant 0 : index
    %c0_4 = arith.constant 0 : index
    %2 = vector.load %arg2[%c0_3, %c0_4] : memref<128x128xf32, #tpu.memory_space<vmem>>, vector<128x128xf32>
    %c0_5 = arith.constant 0 : index
    %c0_6 = arith.constant 0 : index
    %3 = vector.load %arg3[%c0_5, %c0_6] : memref<1x128xf32, #tpu.memory_space<vmem>>, vector<1x128xf32>
    %cst = arith.constant dense<0.000000e+00> : vector<8x128xf32>
    %4 = tpu.matmul %0, %2, %cst {dimension_numbers = #tpu.dot_dimension_numbers<[1], [0], [0], [1], [0, 0, 1, 1], [], []>} : vector<8x128xf32>, vector<128x128xf32>, vector<8x128xf32> -> vector<8x128xf32>
    %5 = vector.broadcast %3 : vector<1x128xf32> to vector<8x128xf32>
    %6 = arith.addf %4, %5 : vector<8x128xf32>
    %cst_7 = arith.constant 0.000000e+00 : f32
    %7 = vector.broadcast %cst_7 : f32 to vector<8x128xf32>
    %8 = arith.maximumf %6, %7 : vector<8x128xf32>
    %c0_8 = arith.constant 0 : index
    %c0_9 = arith.constant 0 : index
    %9 = vector.load %arg4[%c0_8, %c0_9] : memref<128x128xf32, #tpu.memory_space<vmem>>, vector<128x128xf32>
    %c0_10 = arith.constant 0 : index
    %c0_11 = arith.constant 0 : index
    %10 = vector.load %arg5[%c0_10, %c0_11] : memref<1x128xf32, #tpu.memory_space<vmem>>, vector<1x128xf32>
    %cst_12 = arith.constant dense<0.000000e+00> : vector<8x128xf32>
    %11 = tpu.matmul %8, %9, %cst_12 {dimension_numbers = #tpu.dot_dimension_numbers<[1], [0], [0], [1], [0, 0, 1, 1], [], []>} : vector<8x128xf32>, vector<128x128xf32>, vector<8x128xf32> -> vector<8x128xf32>
    %12 = vector.broadcast %10 : vector<1x128xf32> to vector<8x128xf32>
    %13 = arith.addf %11, %12 : vector<8x128xf32>
    %cst_13 = arith.constant 0.000000e+00 : f32
    %14 = vector.broadcast %cst_13 : f32 to vector<8x128xf32>
    %15 = arith.maximumf %13, %14 : vector<8x128xf32>
    %c0_14 = arith.constant 0 : index
    %c0_15 = arith.constant 0 : index
    %16 = vector.load %arg6[%c0_14, %c0_15] : memref<128x256xf32, #tpu.memory_space<vmem>>, vector<128x256xf32>
    %c0_16 = arith.constant 0 : index
    %c0_17 = arith.constant 0 : index
    %17 = vector.load %arg7[%c0_16, %c0_17] : memref<1x256xf32, #tpu.memory_space<vmem>>, vector<1x256xf32>
    %cst_18 = arith.constant dense<0.000000e+00> : vector<8x256xf32>
    %18 = tpu.matmul %15, %16, %cst_18 {dimension_numbers = #tpu.dot_dimension_numbers<[1], [0], [0], [1], [0, 0, 1, 1], [], []>} : vector<8x128xf32>, vector<128x256xf32>, vector<8x256xf32> -> vector<8x256xf32>
    %19 = vector.broadcast %17 : vector<1x256xf32> to vector<8x256xf32>
    %20 = arith.addf %18, %19 : vector<8x256xf32>
    %21 = vector.extract_strided_slice %20 {offsets = [0, 0], sizes = [8, 128], strides = [1, 1]} : vector<8x256xf32> to vector<8x128xf32>
    %22 = vector.extract_strided_slice %20 {offsets = [0, 128], sizes = [8, 128], strides = [1, 1]} : vector<8x256xf32> to vector<8x128xf32>
    %cst_19 = arith.constant 5.000000e-01 : f32
    %23 = vector.broadcast %cst_19 : f32 to vector<8x128xf32>
    %24 = arith.mulf %23, %22 : vector<8x128xf32>
    %25 = math.exp %24 : vector<8x128xf32>
    %26 = arith.mulf %1, %25 : vector<8x128xf32>
    %27 = arith.addf %21, %26 : vector<8x128xf32>
    %c0_20 = arith.constant 0 : index
    %c0_21 = arith.constant 0 : index
    %28 = vector.load %arg8[%c0_20, %c0_21] : memref<128x128xf32, #tpu.memory_space<vmem>>, vector<128x128xf32>
    %c0_22 = arith.constant 0 : index
    %c0_23 = arith.constant 0 : index
    %29 = vector.load %arg9[%c0_22, %c0_23] : memref<1x128xf32, #tpu.memory_space<vmem>>, vector<1x128xf32>
    %cst_24 = arith.constant dense<0.000000e+00> : vector<8x128xf32>
    %30 = tpu.matmul %27, %28, %cst_24 {dimension_numbers = #tpu.dot_dimension_numbers<[1], [0], [0], [1], [0, 0, 1, 1], [], []>} : vector<8x128xf32>, vector<128x128xf32>, vector<8x128xf32> -> vector<8x128xf32>
    %31 = vector.broadcast %29 : vector<1x128xf32> to vector<8x128xf32>
    %32 = arith.addf %30, %31 : vector<8x128xf32>
    %c0_25 = arith.constant 0 : index
    %c0_26 = arith.constant 0 : index
    %33 = vector.load %arg10[%c0_25, %c0_26] : memref<128x128xf32, #tpu.memory_space<vmem>>, vector<128x128xf32>
    %c0_27 = arith.constant 0 : index
    %c0_28 = arith.constant 0 : index
    %34 = vector.load %arg11[%c0_27, %c0_28] : memref<1x128xf32, #tpu.memory_space<vmem>>, vector<1x128xf32>
    %cst_29 = arith.constant dense<0.000000e+00> : vector<8x128xf32>
    %35 = tpu.matmul %32, %33, %cst_29 {dimension_numbers = #tpu.dot_dimension_numbers<[1], [0], [0], [1], [0, 0, 1, 1], [], []>} : vector<8x128xf32>, vector<128x128xf32>, vector<8x128xf32> -> vector<8x128xf32>
    %36 = vector.broadcast %34 : vector<1x128xf32> to vector<8x128xf32>
    %37 = arith.addf %35, %36 : vector<8x128xf32>
    %cst_30 = arith.constant 0.000000e+00 : f32
    %38 = vector.broadcast %cst_30 : f32 to vector<8x128xf32>
    %39 = arith.maximumf %37, %38 : vector<8x128xf32>
    %c0_31 = arith.constant 0 : index
    %c0_32 = arith.constant 0 : index
    %40 = vector.load %arg12[%c0_31, %c0_32] : memref<128x128xf32, #tpu.memory_space<vmem>>, vector<128x128xf32>
    %c0_33 = arith.constant 0 : index
    %c0_34 = arith.constant 0 : index
    %41 = vector.load %arg13[%c0_33, %c0_34] : memref<1x128xf32, #tpu.memory_space<vmem>>, vector<1x128xf32>
    %cst_35 = arith.constant dense<0.000000e+00> : vector<8x128xf32>
    %42 = tpu.matmul %39, %40, %cst_35 {dimension_numbers = #tpu.dot_dimension_numbers<[1], [0], [0], [1], [0, 0, 1, 1], [], []>} : vector<8x128xf32>, vector<128x128xf32>, vector<8x128xf32> -> vector<8x128xf32>
    %43 = vector.broadcast %41 : vector<1x128xf32> to vector<8x128xf32>
    %44 = arith.addf %42, %43 : vector<8x128xf32>
    %45 = arith.negf %44 : vector<8x128xf32>
    %46 = math.exp %45 : vector<8x128xf32>
    %cst_36 = arith.constant 1.000000e+00 : f32
    %47 = vector.broadcast %cst_36 : f32 to vector<8x128xf32>
    %48 = arith.addf %47, %46 : vector<8x128xf32>
    %49 = arith.divf %47, %48 : vector<8x128xf32>
    %c0_37 = arith.constant 0 : index
    %c0_38 = arith.constant 0 : index
    %50 = vector.load %arg14[%c0_37, %c0_38] : memref<8x128xf32, #tpu.memory_space<vmem>>, vector<8x128xf32>
    tpu.vector_store %arg14[%c0_37, %c0_38], %49 {strides = array<i32>} : memref<8x128xf32, #tpu.memory_space<vmem>>, vector<8x128xf32>,
    %c0_39 = arith.constant 0 : index
    %c0_40 = arith.constant 0 : index
    %51 = vector.load %arg15[%c0_39, %c0_40] : memref<8x128xf32, #tpu.memory_space<vmem>>, vector<8x128xf32>
    tpu.vector_store %arg15[%c0_39, %c0_40], %21 {strides = array<i32>} : memref<8x128xf32, #tpu.memory_space<vmem>>, vector<8x128xf32>,
    %c0_41 = arith.constant 0 : index
    %c0_42 = arith.constant 0 : index
    %52 = vector.load %arg16[%c0_41, %c0_42] : memref<8x128xf32, #tpu.memory_space<vmem>>, vector<8x128xf32>
    tpu.vector_store %arg16[%c0_41, %c0_42], %22 {strides = array<i32>} : memref<8x128xf32, #tpu.memory_space<vmem>>, vector<8x128xf32>,
    return
  }
}

</mosaic_0001>

<bundles_post_ra>
// kernel: vae_forward.1
= control target key start
LH: loop header
LB: loop body
LE: loop exit
PB: predicated region body
PF: predicated region fallthrough
CT: control target
= control target key end

     0   :  { %s1748_s0 = inlined_call_operand.vmem [shape: f32[8,128], index: 0, kind: input, shape index: {}]   ;;  %s1749_s1 = inlined_call_operand.vmem [shape: f32[8,128], index: 1, kind: input, shape index: {}]   ;;  %s1750_s2 = inlined_call_operand.hbm [shape: f32[128,128], index: 2, kind: input, shape index: {}]   ;;  %s1751_s3 = inlined_call_operand.vmem [shape: f32[1,128], index: 3, kind: input, shape index: {}]   ;;  %s1752_s4 = inlined_call_operand.hbm [shape: f32[128,128], index: 4, kind: input, shape index: {}]   ;;  %s1753_s5 = inlined_call_operand.vmem [shape: f32[1,128], index: 5, kind: input, shape index: {}]   ;;  %s1754_s6 = inlined_call_operand.hbm [shape: f32[128,256], index: 6, kind: input, shape index: {}]   ;;  %s1755_s7 = inlined_call_operand.vmem [shape: f32[1,256], index: 7, kind: input, shape index: {}]   ;;  %s1756_s8 = inlined_call_operand.hbm [shape: f32[128,128], index: 8, kind: input, shape index: {}]   ;;  %s1757_s9 = inlined_call_operand.vmem [shape: f32[1,128], index: 9, kind: input, shape index: {}]   ;;  %s1758_s10 = inlined_call_operand.hbm [shape: f32[128,128], index: 10, kind: input, shape index: {}]   ;;  %s1759_s11 = inlined_call_operand.vmem [shape: f32[1,128], index: 11, kind: input, shape index: {}]   ;;  %s1760_s12 = inlined_call_operand.hbm [shape: f32[128,128], index: 12, kind: input, shape index: {}]   ;;  %s1761_s13 = inlined_call_operand.vmem [shape: f32[1,128], index: 13, kind: input, shape index: {}]   ;;  %s1762_s14 = inlined_call_operand.hbm [shape: f32[8,128], index: 14, kind: output, shape index: {0}]   ;;  %s1763_s15 = inlined_call_operand.hbm [shape: f32[8,128], index: 15, kind: output, shape index: {1}]   ;;  %s1764_s16 = inlined_call_operand.hbm [shape: f32[8,128], index: 16, kind: output, shape index: {2}]  }
   0x1   :  { %1765 = sst [smem:[#allocation23_spill]] %s1748_s0 }
   0x2   :  { %22 = vsyncpa [#allocation3], 0 }
   0x3   :  { %23 = vsyncpa [#allocation6], 0 }
   0x4   :  { %24 = vsyncpa [#allocation9], 0 }
   0x5   :  { %25 = vsyncpa [#allocation12], 0 }
   0x6   :  { %26 = vsyncpa [#allocation4], 0 }
   0x7   :  { %27 = vsyncpa [#allocation15], 0  ;;  %s1428_s21 = smov [#allocation5]   ;;  %s1429_s23 = smov [#allocation8]  }
   0x8   :  { %s51_s22 = sshll.u32 %s1428_s21, 4  ;;  %s79_s24 = sshll.u32 %s1429_s23, 4  ;;  %s52_s22 = int_to_ptr.vmem [resolvable:$true] %s51_s22  ;;  %s1529_s24 = int_to_ptr.vmem [resolvable:$true] %s79_s24 }
   0x9   :  { %s1218_s27 = scalar_lea.hbm %s1752_s4, 2048 }
   0xa   :  { %p1219_p0 = scmp.ne.s32.totalorder %s1752_s4, %s1218_s27  ;;  %p1222_p1 = scmp.lt.u32.totalorder %s1218_s27, %s1752_s4 }
   0xc   :  { %p1224_p2 = pnand %p1222_p1, %p1219_p0 }
   0xe   :  { %1227 = shalt.err (!%p1224_p2)
}
   0xf   :  { %s1228_s17 = scalar_lea.vmem %s52_s22, 2048  ;;  %p1233_p4 = scmp.lt.s32.totalorder %s52_s22, %s52_s22 }
  0x10   :  { %p1229_p3 = scmp.ne.s32.totalorder %s52_s22, %s1228_s17  ;;  %p1234_p5 = scmp.lt.s32.totalorder %s1228_s17, %s1228_s17 }
  0x12   :  { %p1235_p6 = por %p1234_p5, %p1233_p4 }
  0x14   :  { %p1236_p7 = pnand %p1235_p6, %p1229_p3 }
  0x16   :  { %1239 = shalt.err (!%p1236_p7)
}
  0x17   :  { %s1430_s18 = smov 128   ;;  %s1431_s19 = smov 8  }
  0x18   :  { %57 = dma.hbm_to_vmem [thread:$0]  %s1752_s4, 2048, %s52_s22, [#allocation6], %s1430_s18, %s1430_s18, %s1431_s19  }
  0x19   :  { %s1240_s26 = scalar_lea.hbm %s1756_s8, 2048 }
  0x1a   :  { %p1241_p8 = scmp.ne.s32.totalorder %s1756_s8, %s1240_s26  ;;  %p1244_p9 = scmp.lt.u32.totalorder %s1240_s26, %s1756_s8 }
  0x1c   :  { %p1246_p10 = pnand %p1244_p9, %p1241_p8 }
  0x1e   :  { %1249 = shalt.err (!%p1246_p10)
}
  0x1f   :  { %s1250_s0 = scalar_lea.vmem %s1529_s24, 2048  ;;  %p1255_p12 = scmp.lt.s32.totalorder %s1529_s24, %s1529_s24 }
  0x20   :  { %p1251_p11 = scmp.ne.s32.totalorder %s1529_s24, %s1250_s0  ;;  %p1256_p13 = scmp.lt.s32.totalorder %s1250_s0, %s1250_s0 }
  0x22   :  { %p1257_p0 = por %p1256_p13, %p1255_p12 }
  0x24   :  { %p1258_p1 = pnand %p1257_p0, %p1251_p11 }
  0x26   :  { %1261 = shalt.err (!%p1258_p1)
}
  0x27   :  { %85 = dma.hbm_to_vmem [thread:$0]  %s1756_s8, 2048, %s1529_s24, [#allocation9], %s1430_s18, %s1430_s18, %s1431_s19  }
  0x28   :  { %s1432_s17 = smov [#allocation2]   ;;  %s1433_s21 = smov [#allocation7]  }
  0x29   :  { %s37_s20 = sshll.u32 %s1432_s17, 4  ;;  %s65_s23 = sshll.u32 %s1433_s21, 4  ;;  %s38_s20 = int_to_ptr.vmem [resolvable:$true] %s37_s20  ;;  %s1566_s23 = int_to_ptr.vmem [resolvable:$true] %s65_s23 }
  0x2a   :  { %s1262_s27 = scalar_lea.hbm %s1750_s2, 2048 }
  0x2b   :  { %p1263_p2 = scmp.ne.s32.totalorder %s1750_s2, %s1262_s27  ;;  %p1266_p3 = scmp.lt.u32.totalorder %s1262_s27, %s1750_s2 }
  0x2d   :  { %p1268_p4 = pnand %p1266_p3, %p1263_p2 }
  0x2f   :  { %1271 = shalt.err (!%p1268_p4)
}
  0x30   :  { %s1272_s8 = scalar_lea.vmem %s38_s20, 2048  ;;  %p1277_p6 = scmp.lt.s32.totalorder %s38_s20, %s38_s20 }
  0x31   :  { %p1273_p5 = scmp.ne.s32.totalorder %s38_s20, %s1272_s8  ;;  %p1278_p7 = scmp.lt.s32.totalorder %s1272_s8, %s1272_s8 }
  0x33   :  { %p1279_p8 = por %p1278_p7, %p1277_p6 }
  0x35   :  { %p1280_p9 = pnand %p1279_p8, %p1273_p5 }
  0x37   :  { %1283 = shalt.err (!%p1280_p9)
}
  0x38   :  { %43 = dma.hbm_to_vmem [thread:$0]  %s1750_s2, 2048, %s38_s20, [#allocation3], %s1430_s18, %s1430_s18, %s1431_s19  }
  0x39   :  { %s1284_s21 = scalar_lea.hbm %s1754_s6, 4096 }
  0x3a   :  { %p1285_p10 = scmp.ne.s32.totalorder %s1754_s6, %s1284_s21  ;;  %p1288_p11 = scmp.lt.u32.totalorder %s1284_s21, %s1754_s6 }
  0x3c   :  { %p1290_p12 = pnand %p1288_p11, %p1285_p10 }
  0x3e   :  { %1293 = shalt.err (!%p1290_p12)
}
  0x3f   :  { %s1294_s29 = scalar_lea.vmem %s1566_s23, 4096  ;;  %p1299_p0 = scmp.lt.s32.totalorder %s1566_s23, %s1566_s23 }
  0x40   :  { %p1295_p13 = scmp.ne.s32.totalorder %s1566_s23, %s1294_s29  ;;  %p1300_p1 = scmp.lt.s32.totalorder %s1294_s29, %s1294_s29 }
  0x42   :  { %p1301_p2 = por %p1300_p1, %p1299_p0 }
  0x44   :  { %p1302_p3 = pnand %p1301_p2, %p1295_p13 }
  0x46   :  { %1305 = shalt.err (!%p1302_p3)
}
  0x47   :  { %s1434_s2 = smov 256   ;;  %s1435_s20 = smov 16  }
  0x48   :  { %71 = dma.hbm_to_vmem [thread:$0]  %s1754_s6, 4096, %s1566_s23, [#allocation6], %s1434_s2, %s1434_s2, %s1435_s20  }
  0x49   :  { %s1436_s8 = smov [#allocation10]   ;;  %s1437_s4 = smov [#allocation11]  }
  0x4a   :  { %s93_s24 = sshll.u32 %s1436_s8, 4  ;;  %s107_s22 = sshll.u32 %s1437_s4, 4  ;;  %s94_s24 = int_to_ptr.vmem [resolvable:$true] %s93_s24  ;;  %s1600_s22 = int_to_ptr.vmem [resolvable:$true] %s107_s22 }
  0x4b   :  { %s1306_s25 = scalar_lea.hbm %s1758_s10, 2048 }
  0x4c   :  { %p1307_p4 = scmp.ne.s32.totalorder %s1758_s10, %s1306_s25  ;;  %p1310_p5 = scmp.lt.u32.totalorder %s1306_s25, %s1758_s10 }
  0x4e   :  { %p1312_p6 = pnand %p1310_p5, %p1307_p4 }
  0x50   :  { %1315 = shalt.err (!%p1312_p6)
}
  0x51   :  { %s1316_s6 = scalar_lea.vmem %s94_s24, 2048  ;;  %p1321_p8 = scmp.lt.s32.totalorder %s94_s24, %s94_s24 }
  0x52   :  { %p1317_p7 = scmp.ne.s32.totalorder %s94_s24, %s1316_s6  ;;  %p1322_p9 = scmp.lt.s32.totalorder %s1316_s6, %s1316_s6 }
  0x54   :  { %p1323_p10 = por %p1322_p9, %p1321_p8 }
  0x56   :  { %p1324_p11 = pnand %p1323_p10, %p1317_p7 }
  0x58   :  { %1327 = shalt.err (!%p1324_p11)
}
  0x59   :  { %99 = dma.hbm_to_vmem [thread:$0]  %s1758_s10, 2048, %s94_s24, [#allocation9], %s1430_s18, %s1430_s18, %s1431_s19  }
  0x5a   :  { %s1328_s0 = scalar_lea.hbm %s1760_s12, 2048 }
  0x5b   :  { %p1329_p12 = scmp.ne.s32.totalorder %s1760_s12, %s1328_s0  ;;  %p1332_p13 = scmp.lt.u32.totalorder %s1328_s0, %s1760_s12 }
  0x5d   :  { %p1334_p0 = pnand %p1332_p13, %p1329_p12 }
  0x5f   :  { %1337 = shalt.err (!%p1334_p0)
}
  0x60   :  { %s1338_s25 = scalar_lea.vmem %s1600_s22, 2048  ;;  %p1343_p2 = scmp.lt.s32.totalorder %s1600_s22, %s1600_s22 }
  0x61   :  { %p1339_p1 = scmp.ne.s32.totalorder %s1600_s22, %s1338_s25  ;;  %p1344_p3 = scmp.lt.s32.totalorder %s1338_s25, %s1338_s25 }
  0x63   :  { %p1345_p4 = por %p1344_p3, %p1343_p2 }
  0x65   :  { %p1346_p5 = pnand %p1345_p4, %p1339_p1 }
  0x67   :  { %1349 = shalt.err (!%p1346_p5)
}
  0x68   :  { %113 = dma.hbm_to_vmem [thread:$0]  %s1760_s12, 2048, %s1600_s22, [#allocation12], %s1430_s18, %s1430_s18, %s1431_s19  }
  0x69   :  { %1416 = dma.done.wait [#allocation3], 2048  }
  0x6a   :  { %1417 = vsyncadd [#allocation3], 4294965248 }
  0x6b   :  { %1418 = dma.done.wait [#allocation6], 6144  }
  0x6c   :  { %1419 = vsyncadd [#allocation6], 4294961152 }
  0x6d   :  { %1420 = dma.done.wait [#allocation9], 4096  }
  0x6e   :  { %1421 = vsyncadd [#allocation9], 4294963200 }
  0x6f   :  { %1422 = dma.done.wait [#allocation12], 2048  }
  0x70   :  { %1423 = vsyncadd [#allocation12], 4294965248  ;;  %v1438_v0 = vmov 0.0|0.0   ;;  %vm1439_vm0 = vmmov 0   ;;  %v1440_v1 = vmov 0.0   ;;  %v136_v2 = vld [vmem:[#allocation2] sm:$0xff] }
  0x71   :  { %1044 = vmatprep.subr.bf16.mxu0 %v1438_v0  ;;  %901 = vmatprep.mubr.msk.f32.mxu0 %vm1439_vm0, %v1440_v1  ;;  %v137_v3 = vld [vmem:[#allocation2 + $0x8] sm:$0xff]  ;;  %v138_v4 = vld [vmem:[#allocation2 + $0x10] sm:$0xff]  ;;  %v139_v6 = vld [vmem:[#allocation2 + $0x18] sm:$0xff]  ;;  %s1766_s19 = sld [smem:[#allocation23_spill]]  ;;  %s1441_s20 = smov [#allocation14]  }
  0x72   :  { %1068 = vmatprep.subr.bf16.mxu1 %v1438_v0  ;;  %936 = vmatprep.mubr.msk.f32.mxu1 %vm1439_vm0, %v1440_v1  ;;  %v1045_v5 = vpack.c.bf16 %v137_v3, %v136_v2  ;;  %v1048_v7 = vpack.c.bf16 %v139_v6, %v138_v4  ;;  %v140_v8 = vld [vmem:[#allocation2 + $0x20] sm:$0xff]  ;;  %v141_v9 = vld [vmem:[#allocation2 + $0x28] sm:$0xff]  ;;  %v232_v12 = vld [vmem:[#allocation5 + $0x10] sm:$0xff]  ;;  %s749_s30 = sshll.u32 %s1441_s20, 4  ;;  %s750_s30 = int_to_ptr.vmem [resolvable:$true] %s749_s30 }
  0x73   :  { %v230_v10 = vld [vmem:[#allocation5] sm:$0xff]  ;;  %v231_v11 = vld [vmem:[#allocation5 + $0x8] sm:$0xff]  ;;  %v233_v13 = vld [vmem:[#allocation5 + $0x18] sm:$0xff]  ;;  %v1051_v14 = vpack.c.bf16 %v141_v9, %v140_v8  ;;  %p1355_p7 = scmp.lt.s32.totalorder %s750_s30, %s750_s30 }
  0x74   :  { %1046 = vmatpush3.bf16.msra.mxu0 %v1045_v5  ;;  %v1069_v15 = vpack.c.bf16 %v231_v11, %v230_v10  ;;  %v142_v16 = vld [vmem:[#allocation2 + $0x30] sm:$0xff]  ;;  %v143_v17 = vld [vmem:[#allocation2 + $0x38] sm:$0xff]  ;;  %v1072_v18 = vpack.c.bf16 %v233_v13, %v232_v12  ;;  %v234_v19 = vld [vmem:[#allocation5 + $0x20] sm:$0xff] }
  0x75   :  { %1047 = vmatprep.subr.bf16.mxu0 %v1438_v0  ;;  %v235_v20 = vld [vmem:[#allocation5 + $0x28] sm:$0xff]  ;;  %v1054_v21 = vpack.c.bf16 %v143_v17, %v142_v16  ;;  %v144_v22 = vld [vmem:[#allocation2 + $0x40] sm:$0xff]  ;;  %v236_v25 = vld [vmem:[#allocation5 + $0x30] sm:$0xff] }
  0x76   :  { %1070 = vmatpush3.bf16.msra.mxu1 %v1069_v15  ;;  %v145_v23 = vld [vmem:[#allocation2 + $0x48] sm:$0xff]  ;;  %v1075_v24 = vpack.c.bf16 %v235_v20, %v234_v19  ;;  %v237_v26 = vld [vmem:[#allocation5 + $0x38] sm:$0xff]  ;;  %v146_v28 = vld [vmem:[#allocation2 + $0x50] sm:$0xff] }
  0x77   :  { %1071 = vmatprep.subr.bf16.mxu1 %v1438_v0  ;;  %v1057_v27 = vpack.c.bf16 %v145_v23, %v144_v22  ;;  %v147_v29 = vld [vmem:[#allocation2 + $0x58] sm:$0xff]  ;;  %v1078_v30 = vpack.c.bf16 %v237_v26, %v236_v25  ;;  %v238_v31 = vld [vmem:[#allocation5 + $0x40] sm:$0xff]  ;;  %v239_v32 = vld [vmem:[#allocation5 + $0x48] sm:$0xff] }
  0x78   :  { %1049 = vmatpush3.bf16.msra.mxu0 %v1048_v7  ;;  %v1060_v33 = vpack.c.bf16 %v147_v29, %v146_v28  ;;  %v148_v34 = vld [vmem:[#allocation2 + $0x60] sm:$0xff]  ;;  %v149_v35 = vld [vmem:[#allocation2 + $0x68] sm:$0xff]  ;;  %v1081_v36 = vpack.c.bf16 %v239_v32, %v238_v31  ;;  %v240_v37 = vld [vmem:[#allocation5 + $0x50] sm:$0xff] }
  0x79   :  { %1050 = vmatprep.subr.bf16.mxu0 %v1438_v0  ;;  %v241_v38 = vld [vmem:[#allocation5 + $0x58] sm:$0xff]  ;;  %v1063_v39 = vpack.c.bf16 %v149_v35, %v148_v34  ;;  %v150_v40 = vld [vmem:[#allocation2 + $0x70] sm:$0xff]  ;;  %v242_v43 = vld [vmem:[#allocation5 + $0x60] sm:$0xff] }
  0x7a   :  { %1073 = vmatpush3.bf16.msra.mxu1 %v1072_v18  ;;  %v151_v41 = vld [vmem:[#allocation2 + $0x78] sm:$0xff]  ;;  %v1084_v42 = vpack.c.bf16 %v241_v38, %v240_v37  ;;  %v243_v44 = vld [vmem:[#allocation5 + $0x68] sm:$0xff]  ;;  %v134_v47 = vld [vmem:[%s1766_s19] sm:$0xff] }
  0x7b   :  { %1074 = vmatprep.subr.bf16.mxu1 %v1438_v0  ;;  %v1066_v45 = vpack.c.bf16 %v151_v41, %v150_v40  ;;  %v1087_v46 = vpack.c.bf16 %v243_v44, %v242_v43  ;;  %v244_v48 = vld [vmem:[#allocation5 + $0x70] sm:$0xff]  ;;  %v245_v49 = vld [vmem:[#allocation5 + $0x78] sm:$0xff]  ;;  %v325_v51 = vld [vmem:[#allocation7 + $0x8] sm:$0xff] }
  0x7c   :  { %1052 = vmatpush3.bf16.msra.mxu0 %v1051_v14  ;;  %v1090_v50 = vpack.c.bf16 %v245_v49, %v244_v48  ;;  %v327_v52 = vld [vmem:[#allocation7 + $0x18] sm:$0xff]  ;;  %v324_v53 = vld [vmem:[#allocation7] sm:$0xff]  ;;  %v326_v55 = vld [vmem:[#allocation7 + $0x10] sm:$0xff] }
  0x7d   :  { %1053 = vmatprep.subr.bf16.mxu0 %v1438_v0  ;;  %v1092_v54 = vpack.c.bf16 %v327_v52, %v325_v51  ;;  %v329_v56 = vld [vmem:[#allocation7 + $0x28] sm:$0xff]  ;;  %v331_v57 = vld [vmem:[#allocation7 + $0x38] sm:$0xff]  ;;  %v1094_v58 = vpack.c.bf16 %v326_v55, %v324_v53  ;;  %v328_v60 = vld [vmem:[#allocation7 + $0x20] sm:$0xff] }
  0x7e   :  { %1076 = vmatpush3.bf16.msra.mxu1 %v1075_v24  ;;  %v1096_v59 = vpack.c.bf16 %v331_v57, %v329_v56  ;;  %v330_v61 = vld [vmem:[#allocation7 + $0x30] sm:$0xff]  ;;  %v333_v62 = vld [vmem:[#allocation7 + $0x48] sm:$0xff]  ;;  %v335_v63 = vld [vmem:[#allocation7 + $0x58] sm:$0xff] }
  0x7f   :  { %1077 = vmatprep.subr.bf16.mxu1 %v1438_v0  ;;  %v1098_v2 = vpack.c.bf16 %v330_v61, %v328_v60  ;;  %v1100_v3 = vpack.c.bf16 %v335_v63, %v333_v62  ;;  %v332_v4 = vld [vmem:[#allocation7 + $0x40] sm:$0xff]  ;;  %v334_v5 = vld [vmem:[#allocation7 + $0x50] sm:$0xff]  ;;  %v337_v6 = vld [vmem:[#allocation7 + $0x68] sm:$0xff] }
  0x80   :  { %1055 = vmatpush3.bf16.msra.mxu0 %v1054_v21  ;;  %v339_v7 = vld [vmem:[#allocation7 + $0x78] sm:$0xff]  ;;  %v1102_v8 = vpack.c.bf16 %v334_v5, %v332_v4  ;;  %v336_v10 = vld [vmem:[#allocation7 + $0x60] sm:$0xff]  ;;  %v338_v11 = vld [vmem:[#allocation7 + $0x70] sm:$0xff] }
  0x81   :  { %1056 = vmatprep.subr.bf16.mxu0 %v1438_v0  ;;  %v1104_v9 = vpack.c.bf16 %v339_v7, %v337_v6  ;;  %v341_v12 = vld [vmem:[#allocation7 + $0x88] sm:$0xff]  ;;  %v343_v13 = vld [vmem:[#allocation7 + $0x98] sm:$0xff]  ;;  %v1106_v14 = vpack.c.bf16 %v338_v11, %v336_v10  ;;  %v340_v16 = vld [vmem:[#allocation7 + $0x80] sm:$0xff] }
  0x82   :  { %1079 = vmatpush3.bf16.msra.mxu1 %v1078_v30  ;;  %v1108_v15 = vpack.c.bf16 %v343_v13, %v341_v12  ;;  %v342_v17 = vld [vmem:[#allocation7 + $0x90] sm:$0xff]  ;;  %v345_v18 = vld [vmem:[#allocation7 + $0xa8] sm:$0xff]  ;;  %v347_v19 = vld [vmem:[#allocation7 + $0xb8] sm:$0xff] }
  0x83   :  { %1080 = vmatprep.subr.bf16.mxu1 %v1438_v0  ;;  %v1110_v20 = vpack.c.bf16 %v342_v17, %v340_v16  ;;  %v1112_v21 = vpack.c.bf16 %v347_v19, %v345_v18  ;;  %v344_v22 = vld [vmem:[#allocation7 + $0xa0] sm:$0xff]  ;;  %v346_v23 = vld [vmem:[#allocation7 + $0xb0] sm:$0xff]  ;;  %v349_v24 = vld [vmem:[#allocation7 + $0xc8] sm:$0xff] }
  0x84   :  { %1058 = vmatpush3.bf16.msra.mxu0 %v1057_v27  ;;  %v351_v25 = vld [vmem:[#allocation7 + $0xd8] sm:$0xff]  ;;  %v1114_v26 = vpack.c.bf16 %v346_v23, %v344_v22  ;;  %v348_v28 = vld [vmem:[#allocation7 + $0xc0] sm:$0xff]  ;;  %v350_v29 = vld [vmem:[#allocation7 + $0xd0] sm:$0xff] }
  0x85   :  { %1059 = vmatprep.subr.bf16.mxu0 %v1438_v0  ;;  %v1116_v27 = vpack.c.bf16 %v351_v25, %v349_v24  ;;  %v1118_v30 = vpack.c.bf16 %v350_v29, %v348_v28  ;;  %v778_v31 = vld [vmem:[%s1751_s3] ss:$0 sm:$0xff]  ;;  %v355_v37 = vld [vmem:[#allocation7 + $0xf8] sm:$0xff]  ;;  %v354_v40 = vld [vmem:[#allocation7 + $0xf0] sm:$0xff] }
  0x86   :  { %1082 = vmatpush3.bf16.msra.mxu1 %v1081_v36  ;;  %v353_v36 = vld [vmem:[#allocation7 + $0xe8] sm:$0xff]  ;;  %v446_v44 = vld [vmem:[#allocation8 + $0x10] sm:$0xff]  ;;  %v779_v48 = vld [vmem:[%s1753_s5] ss:$0 sm:$0xff] }
  0x87   :  { %1083 = vmatprep.subr.bf16.mxu1 %v1438_v0  ;;  %v1120_v38 = vpack.c.bf16 %v355_v37, %v353_v36  ;;  %v445_v43 = vld [vmem:[#allocation8 + $0x8] sm:$0xff]  ;;  %v448_v53 = vld [vmem:[#allocation8 + $0x20] sm:$0xff]  ;;  %v450_v56 = vld [vmem:[#allocation8 + $0x30] sm:$0xff] }
  0x88   :  { %1061 = vmatpush3.bf16.msra.mxu0 %v1060_v33  ;;  %v451_v57 = vld [vmem:[#allocation8 + $0x38] sm:$0xff]  ;;  %v453_v60 = vld [vmem:[#allocation8 + $0x48] sm:$0xff]  ;;  %v454_v62 = vld [vmem:[#allocation8 + $0x50] sm:$0xff] }
  0x89   :  { %1062 = vmatprep.subr.bf16.mxu0 %v1438_v0  ;;  %v455_v63 = vld [vmem:[#allocation8 + $0x58] sm:$0xff]  ;;  %v457_v4 = vld [vmem:[#allocation8 + $0x68] sm:$0xff]  ;;  %v458_v6 = vld [vmem:[#allocation8 + $0x70] sm:$0xff] }
  0x8a   :  { %1085 = vmatpush3.bf16.msra.mxu1 %v1084_v42  ;;  %v444_v42 = vld [vmem:[#allocation8] sm:$0xff]  ;;  %v459_v7 = vld [vmem:[#allocation8 + $0x78] sm:$0xff]  ;;  %v538_v10 = vld [vmem:[#allocation10 + $0x8] sm:$0xff] }
  0x8b   :  { %1086 = vmatprep.subr.bf16.mxu1 %v1438_v0  ;;  %v539_v11 = vld [vmem:[#allocation10 + $0x10] sm:$0xff]  ;;  %v540_v13 = vld [vmem:[#allocation10 + $0x18] sm:$0xff]  ;;  %v542_v16 = vld [vmem:[#allocation10 + $0x28] sm:$0xff] }
  0x8c   :  { %1064 = vmatpush3.bf16.msra.mxu0 %v1063_v39  ;;  %v352_v39 = vld [vmem:[#allocation7 + $0xe0] sm:$0xff]  ;;  %v543_v18 = vld [vmem:[#allocation10 + $0x30] sm:$0xff]  ;;  %v544_v19 = vld [vmem:[#allocation10 + $0x38] sm:$0xff] }
  0x8d   :  { %1065 = vmatprep.subr.bf16.mxu0 %v1438_v0  ;;  %v1122_v41 = vpack.c.bf16 %v354_v40, %v352_v39  ;;  %v546_v22 = vld [vmem:[#allocation10 + $0x48] sm:$0xff]  ;;  %v547_v24 = vld [vmem:[#allocation10 + $0x50] sm:$0xff]  ;;  %v548_v25 = vld [vmem:[#allocation10 + $0x58] sm:$0xff] }
  0x8e   :  { %1088 = vmatpush3.bf16.msra.mxu1 %v1087_v46  ;;  %v447_v46 = vld [vmem:[#allocation8 + $0x18] sm:$0xff]  ;;  %v550_v28 = vld [vmem:[#allocation10 + $0x68] sm:$0xff] }
  0x8f   :  { %1089 = vmatprep.subr.bf16.mxu1 %v1438_v0 }
  0x90   :  { %1067 = vmatpush3.bf16.msra.mxu0 %v1066_v45  ;;  %v1125_v45 = vpack.c.bf16 %v445_v43, %v444_v42  ;;  %v135_v43 = vld [vmem:[%s1749_s1] sm:$0xff] }
  0x91   :  { %1093 = vmatprep.subr.bf16.mxu0 %v1092_v54  ;;  %v449_v54 = vld [vmem:[#allocation8 + $0x28] sm:$0xff] }
  0x92   :  { %1091 = vmatpush3.bf16.msra.mxu1 %v1090_v50  ;;  %v1131_v55 = vpack.c.bf16 %v449_v54, %v448_v53  ;;  %v634_v54 = vld [vmem:[#allocation11 + $0x18] sm:$0xff] }
  0x93   :  { %902 = vmatmul.mubr.f32.vlgmr.msra.gmra.mrb[0].mxu0 %v134_v47  ;;  %1124 = vmatprep.subr.bf16.mxu1 %v1438_v0  ;;  %v1128_v47 = vpack.c.bf16 %v447_v46, %v446_v44 }
  0x94   :  { %432 = vmatprep.mubr.f32.mxu0 %v1440_v1  ;;  %1095 = vmatpush1.bf16.msra.mxu0 %v1094_v58  ;;  %v1134_v58 = vpack.c.bf16 %v451_v57, %v450_v56  ;;  %v635_v56 = vld [vmem:[#allocation11 + $0x20] sm:$0xff]  ;;  %v636_v57 = vld [vmem:[#allocation11 + $0x28] sm:$0xff] }
  0x95   :  { %1097 = vmatprep.subr.bf16.mxu0 %v1096_v59  ;;  %v452_v59 = vld [vmem:[#allocation8 + $0x40] sm:$0xff] }
  0x96   :  { %v1137_v61 = vpack.c.bf16 %v453_v60, %v452_v59  ;;  %v638_v59 = vld [vmem:[#allocation11 + $0x38] sm:$0xff] }
  0x98   :  { %1099 = vmatpush1.bf16.msra.mxu0 %v1098_v2  ;;  %v1140_v2 = vpack.c.bf16 %v455_v63, %v454_v62  ;;  %v640_v62 = vld [vmem:[#allocation11 + $0x48] sm:$0xff] }
  0x99   :  { %1101 = vmatprep.subr.bf16.mxu0 %v1100_v3  ;;  %v456_v3 = vld [vmem:[#allocation8 + $0x60] sm:$0xff] }
  0x9a   :  { %v1143_v5 = vpack.c.bf16 %v457_v4, %v456_v3  ;;  %v642_v3 = vld [vmem:[#allocation11 + $0x58] sm:$0xff] }
  0x9c   :  { %1103 = vmatpush1.bf16.msra.mxu0 %v1102_v8  ;;  %v1146_v8 = vpack.c.bf16 %v459_v7, %v458_v6  ;;  %v644_v6 = vld [vmem:[#allocation11 + $0x68] sm:$0xff] }
  0x9d   :  { %1105 = vmatprep.subr.bf16.mxu0 %v1104_v9  ;;  %v537_v9 = vld [vmem:[#allocation10] sm:$0xff] }
  0x9e   :  { %v1149_v12 = vpack.c.bf16 %v538_v10, %v537_v9 }
  0xa0   :  { %1107 = vmatpush1.bf16.msra.mxu0 %v1106_v14  ;;  %v1152_v14 = vpack.c.bf16 %v540_v13, %v539_v11  ;;  %v646_v13 = vld [vmem:[#allocation11 + $0x78] sm:$0xff] }
  0xa1   :  { %1109 = vmatprep.subr.bf16.mxu0 %v1108_v15  ;;  %v541_v15 = vld [vmem:[#allocation10 + $0x20] sm:$0xff] }
  0xa2   :  { %v1155_v17 = vpack.c.bf16 %v542_v16, %v541_v15  ;;  %v781_v15 = vld [vmem:[%s1759_s11] ss:$0 sm:$0xff] }
  0xa4   :  { %1111 = vmatpush1.bf16.msra.mxu0 %v1110_v20  ;;  %v1158_v20 = vpack.c.bf16 %v544_v19, %v543_v18 }
  0xa5   :  { %1113 = vmatprep.subr.bf16.mxu0 %v1112_v21  ;;  %v545_v21 = vld [vmem:[#allocation10 + $0x40] sm:$0xff] }
  0xa6   :  { %v1161_v23 = vpack.c.bf16 %v546_v22, %v545_v21 }
  0xa8   :  { %1115 = vmatpush1.bf16.msra.mxu0 %v1114_v26  ;;  %v1164_v26 = vpack.c.bf16 %v548_v25, %v547_v24 }
  0xa9   :  { %1117 = vmatprep.subr.bf16.mxu0 %v1116_v27  ;;  %v549_v27 = vld [vmem:[#allocation10 + $0x60] sm:$0xff] }
  0xaa   :  { %v1167_v29 = vpack.c.bf16 %v550_v28, %v549_v27 }
  0xac   :  { %1119 = vmatpush1.bf16.msra.mxu0 %v1118_v30  ;;  %v358_v30 = vlaneseq }
  0xad   :  { %1121 = vmatprep.subr.bf16.mxu0 %v1120_v38 }
  0xb0   :  { %1123 = vmatpush1.bf16.msra.mxu0 %v1122_v41 }
  0xb1   :  { %1148 = vmatprep.subr.bf16.mxu0 %v1438_v0 }
 0x166   :  { %v225_v32 = vpop.f32.mrb[0].mxu0 }
 0x167   :  { %v226_v33 = vadd.f32 %v778_v31, %v225_v32  ;;  %v903_v34 = vpop.f32.mrb[1].mxu0  ;;  %v359_v31 = vshrl.u32 %v358_v30, 7 }
 0x169   :  { %v229_v35 = vmax.f32 %v226_v33, 0.0  ;;  %v360_v32 = vsub.s32 0, %v359_v31  ;;  %v356_v33 = vld [vmem:[%s1755_s7] sm:$0x3]  ;;  %v364_v34 = vsub.s32 1, %v359_v31 }
 0x16b   :  { %937 = vmatmul.mubr.f32.vlgmr.msra.gmra.mrb[0].mxu1 %v229_v35  ;;  %v361_v35 = vrot.slane %v356_v33, %v360_v32  ;;  %v365_v36 = vrot.slane %v356_v33, %v364_v34 }
 0x16c   :  { %971 = vmatprep.mubr.msk.f32.mxu1 %vm1439_vm0, %v1440_v1  ;;  %1126 = vmatpush3.bf16.msra.mxu1 %v1125_v45 }
 0x16d   :  { %1127 = vmatprep.subr.bf16.mxu1 %v1438_v0 }
 0x170   :  { %1129 = vmatpush3.bf16.msra.mxu1 %v1128_v47  ;;  %v551_v47 = vld [vmem:[#allocation10 + $0x70] sm:$0xff] }
 0x171   :  { %1130 = vmatprep.subr.bf16.mxu1 %v1438_v0 }
 0x174   :  { %1132 = vmatpush3.bf16.msra.mxu1 %v1131_v55 }
 0x175   :  { %1133 = vmatprep.subr.bf16.mxu1 %v1438_v0 }
 0x178   :  { %1135 = vmatpush3.bf16.msra.mxu1 %v1134_v58  ;;  %v1179_v58 = vpack.c.bf16 %v636_v57, %v635_v56 }
 0x179   :  { %1136 = vmatprep.subr.bf16.mxu1 %v1438_v0 }
 0x17c   :  { %1138 = vmatpush3.bf16.msra.mxu1 %v1137_v61  ;;  %v639_v61 = vld [vmem:[#allocation11 + $0x40] sm:$0xff] }
 0x17d   :  { %1139 = vmatprep.subr.bf16.mxu1 %v1438_v0  ;;  %v1185_v63 = vpack.c.bf16 %v640_v62, %v639_v61 }
 0x180   :  { %1141 = vmatpush3.bf16.msra.mxu1 %v1140_v2  ;;  %v641_v2 = vld [vmem:[#allocation11 + $0x50] sm:$0xff] }
 0x181   :  { %1142 = vmatprep.subr.bf16.mxu1 %v1438_v0  ;;  %v1188_v4 = vpack.c.bf16 %v642_v3, %v641_v2 }
 0x184   :  { %1144 = vmatpush3.bf16.msra.mxu1 %v1143_v5  ;;  %v643_v5 = vld [vmem:[#allocation11 + $0x60] sm:$0xff] }
 0x185   :  { %1145 = vmatprep.subr.bf16.mxu1 %v1438_v0  ;;  %v1191_v7 = vpack.c.bf16 %v644_v6, %v643_v5 }
 0x188   :  { %1147 = vmatpush3.bf16.msra.mxu1 %v1146_v8  ;;  %v780_v8 = vld [vmem:[%s1757_s9] ss:$0 sm:$0xff]  ;;  %s1350_s9 = scalar_lea.vmem %s750_s30, 128 }
 0x189   :  { %1172 = vmatprep.subr.bf16.mxu1 %v1438_v0  ;;  %p1351_p6 = scmp.ne.s32.totalorder %s750_s30, %s1350_s9  ;;  %p1356_p8 = scmp.lt.s32.totalorder %s1350_s9, %s1350_s9 }
 0x18b   :  { %p1357_p9 = por %p1356_p8, %p1355_p7 }
 0x18d   :  { %p1358_p10 = pnand %p1357_p9, %p1351_p6 }
 0x23e   :  { %v319_v49 = vpop.f32.mrb[0].mxu1 }
 0x23f   :  { %v320_v50 = vadd.f32 %v779_v48, %v319_v49  ;;  %v938_v51 = vpop.f32.mrb[1].mxu1  ;;  %v552_v48 = vld [vmem:[#allocation10 + $0x78] sm:$0xff] }
 0x240   :  { %v1170_v49 = vpack.c.bf16 %v552_v48, %v551_v47  ;;  %v632_v51 = vld [vmem:[#allocation11 + $0x8] sm:$0xff] }
 0x241   :  { %v323_v52 = vmax.f32 %v320_v50, 0.0  ;;  %v631_v50 = vld [vmem:[#allocation11] sm:$0xff] }
 0x242   :  { %v1173_v53 = vpack.c.bf16 %v632_v51, %v631_v50 }
 0x243   :  { %433 = vmatmul.mubr.f32.vlgmr.msra.gmra.mrb[2].mxu0 %v323_v52  ;;  %v633_v52 = vld [vmem:[#allocation11 + $0x10] sm:$0xff] }
 0x244   :  { %1006 = vmatprep.mubr.msk.f32.mxu0 %vm1439_vm0, %v1440_v1  ;;  %1150 = vmatpush3.bf16.msra.mxu0 %v1149_v12  ;;  %v1176_v55 = vpack.c.bf16 %v634_v54, %v633_v52  ;;  %v645_v12 = vld [vmem:[#allocation11 + $0x70] sm:$0xff] }
 0x245   :  { %1151 = vmatprep.subr.bf16.mxu0 %v1438_v0 }
 0x248   :  { %1153 = vmatpush3.bf16.msra.mxu0 %v1152_v14  ;;  %v1194_v14 = vpack.c.bf16 %v646_v13, %v645_v12 }
 0x249   :  { %1154 = vmatprep.subr.bf16.mxu0 %v1438_v0 }
 0x24c   :  { %1156 = vmatpush3.bf16.msra.mxu0 %v1155_v17 }
 0x24d   :  { %1157 = vmatprep.subr.bf16.mxu0 %v1438_v0 }
 0x250   :  { %1159 = vmatpush3.bf16.msra.mxu0 %v1158_v20 }
 0x251   :  { %1160 = vmatprep.subr.bf16.mxu0 %v1438_v0 }
 0x254   :  { %1162 = vmatpush3.bf16.msra.mxu0 %v1161_v23 }
 0x255   :  { %1163 = vmatprep.subr.bf16.mxu0 %v1438_v0 }
 0x258   :  { %1165 = vmatpush3.bf16.msra.mxu0 %v1164_v26 }
 0x259   :  { %1166 = vmatprep.subr.bf16.mxu0 %v1438_v0 }
 0x25c   :  { %1168 = vmatpush3.bf16.msra.mxu0 %v1167_v29 }
 0x25d   :  { %1169 = vmatprep.subr.bf16.mxu0 %v1438_v0 }
 0x260   :  { %1171 = vmatpush3.bf16.msra.mxu0 %v1170_v49 }
 0x316   :  { %v434_v37 = vpop.f32.mrb[2].mxu0 }
 0x317   :  { %v435_v38 = vadd.f32 %v434_v37, %v361_v35  ;;  %v436_v39 = vpop.f32.mrb[3].mxu0 }
 0x318   :  { %v437_v40 = vadd.f32 %v436_v39, %v365_v36 }
 0x319   :  { %731 = vst [vmem:[#allocation14] sm:$0xff] %v435_v38 }
 0x31a   :  { %v439_v41 = vmul.f32 0.5, %v437_v40  ;;  %732 = vst [vmem:[#allocation16] sm:$0xff] %v437_v40 }
 0x31c   :  { %v440_v42 = vmul.f32 1.442695, %v439_v41 }
 0x31e   :  { %1212 = vpow2.f32 %v440_v42 }
 0x328   :  { %v1213_v44 = vpop.eup %1212 }
 0x329   :  { %v442_v45 = vmul.f32 %v1213_v44, %v135_v43 }
 0x32b   :  { %v443_v46 = vadd.f32 %v442_v45, %v435_v38 }
 0x32d   :  { %972 = vmatmul.mubr.f32.vlgmr.msra.gmra.mrb[2].mxu1 %v443_v46 }
 0x32e   :  { %1041 = vmatprep.mubr.msk.f32.mxu1 %vm1439_vm0, %v1440_v1  ;;  %1174 = vmatpush3.bf16.msra.mxu1 %v1173_v53  ;;  %v637_v1 = vld [vmem:[#allocation11 + $0x30] sm:$0xff] }
 0x32f   :  { %1175 = vmatprep.subr.bf16.mxu1 %v1438_v0  ;;  %v1182_v60 = vpack.c.bf16 %v638_v59, %v637_v1 }
 0x332   :  { %1177 = vmatpush3.bf16.msra.mxu1 %v1176_v55 }
 0x333   :  { %1178 = vmatprep.subr.bf16.mxu1 %v1438_v0 }
 0x336   :  { %1180 = vmatpush3.bf16.msra.mxu1 %v1179_v58 }
 0x337   :  { %1181 = vmatprep.subr.bf16.mxu1 %v1438_v0 }
 0x33a   :  { %1183 = vmatpush3.bf16.msra.mxu1 %v1182_v60 }
 0x33b   :  { %1184 = vmatprep.subr.bf16.mxu1 %v1438_v0 }
 0x33e   :  { %1186 = vmatpush3.bf16.msra.mxu1 %v1185_v63 }
 0x33f   :  { %1187 = vmatprep.subr.bf16.mxu1 %v1438_v0 }
 0x342   :  { %1189 = vmatpush3.bf16.msra.mxu1 %v1188_v4 }
 0x343   :  { %1190 = vmatprep.subr.bf16.mxu1 %v1438_v0 }
 0x346   :  { %1192 = vmatpush3.bf16.msra.mxu1 %v1191_v7 }
 0x347   :  { %1193 = vmatprep.subr.bf16.mxu1 %v1438_v0 }
 0x34a   :  { %1195 = vmatpush3.bf16.msra.mxu1 %v1194_v14 }
 0x400   :  { %v533_v9 = vpop.f32.mrb[2].mxu1 }
 0x401   :  { %v534_v10 = vadd.f32 %v780_v8, %v533_v9  ;;  %v973_v11 = vpop.f32.mrb[3].mxu1 }
 0x403   :  { %1007 = vmatmul.mubr.f32.vlgmr.msra.gmra.mrb[4].mxu0 %v534_v10 }
 0x4d6   :  { %v626_v16 = vpop.f32.mrb[4].mxu0 }
 0x4d7   :  { %v627_v17 = vadd.f32 %v781_v15, %v626_v16  ;;  %v1008_v18 = vpop.f32.mrb[5].mxu0 }
 0x4d9   :  { %v630_v0 = vmax.f32 %v627_v17, 0.0 }
 0x4db   :  { %1042 = vmatmul.mubr.f32.vlgmr.msra.gmra.mrb[4].mxu1 %v630_v0 }
 0x4dc   :  { %1361 = shalt.err (!%p1358_p10)
}
 0x4dd   :  { %s1362_s4 = scalar_lea.hbm %s1763_s15, 128 }
 0x4de   :  { %p1363_p11 = scmp.ne.s32.totalorder %s1763_s15, %s1362_s4  ;;  %p1366_p12 = scmp.lt.u32.totalorder %s1362_s4, %s1763_s15 }
 0x4e0   :  { %p1368_p13 = pnand %p1366_p12, %p1363_p11 }
 0x4e2   :  { %1371 = shalt.err (!%p1368_p13)
}
 0x4e3   :  { %752 = dma.vmem_to_hbm [thread:$0]  %s750_s30, 128, %s1763_s15, [#allocation15]  }
 0x4e4   :  { %s1442_s12 = smov [#allocation16]  }
 0x4e5   :  { %s759_s18 = sshll.u32 %s1442_s12, 4  ;;  %s760_s18 = int_to_ptr.vmem [resolvable:$true] %s759_s18 }
 0x4e6   :  { %s1372_s19 = scalar_lea.vmem %s760_s18, 128  ;;  %p1377_p1 = scmp.lt.s32.totalorder %s760_s18, %s760_s18 }
 0x4e7   :  { %p1373_p0 = scmp.ne.s32.totalorder %s760_s18, %s1372_s19  ;;  %p1378_p2 = scmp.lt.s32.totalorder %s1372_s19, %s1372_s19 }
 0x4e9   :  { %p1379_p3 = por %p1378_p2, %p1377_p1 }
 0x4eb   :  { %p1380_p4 = pnand %p1379_p3, %p1373_p0 }
 0x4ed   :  { %1383 = shalt.err (!%p1380_p4)
}
 0x4ee   :  { %s1384_s3 = scalar_lea.hbm %s1764_s16, 128 }
 0x4ef   :  { %p1385_p5 = scmp.ne.s32.totalorder %s1764_s16, %s1384_s3  ;;  %p1388_p6 = scmp.lt.u32.totalorder %s1384_s3, %s1764_s16 }
 0x4f1   :  { %p1390_p7 = pnand %p1388_p6, %p1385_p5 }
 0x4f3   :  { %1393 = shalt.err (!%p1390_p7)
}
 0x4f4   :  { %762 = dma.vmem_to_hbm [thread:$0]  %s760_s18, 128, %s1764_s16, [#allocation15]   ;;  %v782_v19 = vld [vmem:[%s1761_s13] ss:$0 sm:$0xff] }
 0x4f5   :  { %s1443_s23 = smov [#allocation13]  }
 0x4f6   :  { %s739_s2 = sshll.u32 %s1443_s23, 4  ;;  %s740_s2 = int_to_ptr.vmem [resolvable:$true] %s739_s2 }
 0x4f7   :  { %s1394_s20 = scalar_lea.vmem %s740_s2, 128  ;;  %p1399_p9 = scmp.lt.s32.totalorder %s740_s2, %s740_s2 }
 0x4f8   :  { %p1395_p8 = scmp.ne.s32.totalorder %s740_s2, %s1394_s20  ;;  %p1400_p10 = scmp.lt.s32.totalorder %s1394_s20, %s1394_s20 }
 0x4fa   :  { %p1401_p11 = por %p1400_p10, %p1399_p9 }
 0x4fc   :  { %p1402_p12 = pnand %p1401_p11, %p1395_p8 }
 0x5ae   :  { %v720_v20 = vpop.f32.mrb[4].mxu1 }
 0x5af   :  { %v721_v21 = vadd.f32 %v782_v19, %v720_v20  ;;  %v1043_v22 = vpop.f32.mrb[5].mxu1 }
 0x5b1   :  { %v783_v23 = vmul.f32 -1.442695, %v721_v21 }
 0x5b3   :  { %1214 = vpow2.f32 %v783_v23 }
 0x5bd   :  { %v1215_v24 = vpop.eup %1214 }
 0x5be   :  { %v727_v25 = vadd.f32 1.0, %v1215_v24 }
 0x5c0   :  { %1216 = vrcp.f32 %v727_v25 }
 0x5ca   :  { %v1217_v26 = vpop.eup %1216 }
 0x5cb   :  { %730 = vst [vmem:[#allocation13] sm:$0xff] %v1217_v26 }
 0x5cc   :  { %1405 = shalt.err (!%p1402_p12)
}
 0x5cd   :  { %s1406_s30 = scalar_lea.hbm %s1762_s14, 128 }
 0x5ce   :  { %p1407_p13 = scmp.ne.s32.totalorder %s1762_s14, %s1406_s30  ;;  %p1410_p0 = scmp.lt.u32.totalorder %s1406_s30, %s1762_s14 }
 0x5d0   :  { %p1412_p1 = pnand %p1410_p0, %p1407_p13 }
 0x5d2   :  { %1415 = shalt.err (!%p1412_p1)
}
 0x5d3   :  { %742 = dma.vmem_to_hbm [thread:$0]  %s740_s2, 128, %s1762_s14, [#allocation4]  }
 0x5d4   :  { %1424 = dma.done.wait [#allocation4], 128  }
 0x5d5   :  { %1425 = vsyncadd [#allocation4], 4294967168 }
 0x5d6   :  { %1426 = dma.done.wait [#allocation15], 256  }
 0x5d7   :  { %1427 = vsyncadd [#allocation15], 4294967040 }
 0x5d8   :  { %772 = vsyncpa [#allocation3], 1 }
 0x5d9   :  { %773 = vsyncpa [#allocation6], 1 }
 0x5da   :  { %774 = vsyncpa [#allocation9], 1 }
 0x5db   :  { %775 = vsyncpa [#allocation12], 1 }
 0x5dc   :  { %776 = vsyncpa [#allocation4], 1 }
 0x5dd   :  { %777 = vsyncpa [#allocation15], 1 }

</bundles_post_ra>
